<compile_context>
chip_gen: v7x
topology: tpu7x:2x2x1
jax: 0.10.0
libtpu: 0.0.40
codegen_flags: <defaults>
</compile_context>

<pallas_src>
import functools

import jax
import jax.numpy as jnp
from jax import lax
from jax.experimental import pallas as pl
from jax.experimental.pallas import tpu as pltpu

LANES = 128
SUBLANES = 8
CHUNK_ROWS = 1024  # rows per inner streaming step (1024 x 128 f32 = 512 KiB)


def _device_kind():
    try:
        return jax.devices()[0].device_kind.lower()
    except Exception:  # pragma: no cover - defensive
        return ""


def _select_tile_rows(kind):
    # v5-class default scoped VMEM is 16 MiB -> 4096-row blocks (8 MiB
    # pipelined, f32).  v6e/v7x -> 8192-row blocks (16 MiB pipelined).
    if "v5" in kind:
        return 4096
    return 8192


def _num_tensorcores(kind):
    # Only v7x-class chips have 2 TensorCores; elsewhere a core split is just
    # a serial loop with duplicated DMAs.
    return 2 if "v7" in kind else 1


def _rmse_partial_kernel(x_ref, y_ref, o_ref, *, tile_rows, chunk_rows,
                         valid_rows, blocks_per_core, needs_mask):
    c = pl.program_id(0)   # core / outer split
    i = pl.program_id(1)   # reduction steps within this core's row range

    # Zero this core's resident (8, 128) accumulator at the start of its range.
    @pl.when(i == 0)
    def _():
        o_ref[...] = jnp.zeros_like(o_ref)

    # Unclamped logical row origin of this grid step (the index_map clamps the
    # DMA to stay in bounds; validity is decided from the unclamped position).
    row0 = (c * blocks_per_core + i) * tile_rows

    n_full = tile_rows // chunk_rows
    rem_rows = tile_rows - n_full * chunk_rows

    def chunk_sum(r_local, nrows, mask_rows):
        """(8,128) sum of squared diffs over `nrows` rows at block-local r."""
        xs = x_ref[pl.ds(r_local, nrows), :].astype(jnp.float32)
        ys = y_ref[pl.ds(r_local, nrows), :].astype(jnp.float32)
        d = xs - ys
        if mask_rows:
            rid = (row0 + r_local
                   + lax.broadcasted_iota(jnp.int32, (nrows, 1), 0))
            d = jnp.where(rid < valid_rows, d, jnp.float32(0.0))
        d2 = d * d
        pad = (-nrows) % SUBLANES
        if pad:  # only for tiny single-chunk blocks (nrows < 8 multiples)
            d2 = jnp.concatenate(
                [d2, jnp.zeros((pad, LANES), jnp.float32)], axis=0)
        # (nrows, 128) -> (8, 128): vreg-wise adds only, no cross-lane work.
        return d2.reshape(-1, SUBLANES, LANES).sum(axis=0)

    def block_sum(mask_rows):
        acc = jnp.zeros((SUBLANES, LANES), jnp.float32)
        if n_full == 1:
            acc = chunk_sum(0, chunk_rows, mask_rows)
        elif n_full > 1:
            def body(j, a):
                r = pl.multiple_of(j * chunk_rows, chunk_rows)
                return a + chunk_sum(r, chunk_rows, mask_rows)
            acc = lax.fori_loop(0, n_full, body, acc)
        if rem_rows:
            acc = acc + chunk_sum(n_full * chunk_rows, rem_rows, mask_rows)
        return acc

    if not needs_mask:
        o_ref[...] += block_sum(False)
    else:
        # Only the tail (or a duplicated clamped) block pays the mask ops.
        block_full = (row0 + tile_rows) <= valid_rows

        @pl.when(block_full)
        def _():
            o_ref[...] += block_sum(False)

        @pl.when(jnp.logical_not(block_full))
        def _():
            o_ref[...] += block_sum(True)


def rmse_loss(x, y):
    assert x.shape == y.shape, "RMSELoss expects x and y of the same shape"
    total_n = x.size
    if total_n == 0:
        return jnp.float32(float("nan"))  # matches mean of empty -> nan

    xf = x.reshape(-1)
    yf = y.reshape(-1)

    rem = total_n % LANES
    main_n = total_n - rem

    # <128-element ragged tail: reduce in the wrapper (no full-array pad copy).
    tail = jnp.float32(0.0)
    if rem:
        xt = xf[main_n:].astype(jnp.float32)
        yt = yf[main_n:].astype(jnp.float32)
        dt = xt - yt
        tail = jnp.sum(dt * dt)

    if main_n == 0:
        return jnp.sqrt(tail / jnp.float32(total_n))

    rows = main_n // LANES
    x2 = xf[:main_n].reshape(rows, LANES)   # free (bitcast) when rem == 0
    y2 = yf[:main_n].reshape(rows, LANES)

    kind = _device_kind()
    target_tile = _select_tile_rows(kind)
    num_tc = _num_tensorcores(kind)

    # Tile selection: big blocks, never larger than the array (a block equal
    # to the full dim is always legal).
    tile_rows = min(target_tile, rows)
    chunk_rows = min(CHUNK_ROWS, tile_rows)

    blocks_total = pl.cdiv(rows, tile_rows)
    ncores = min(num_tc, blocks_total)          # clamp the split to the work
    blocks_per_core = pl.cdiv(blocks_total, ncores)
    grid = (ncores, blocks_per_core)
    # Mask needed iff the grid over-covers the row range (partial last block
    # and/or a duplicated clamped block from the core split).
    needs_mask = (ncores * blocks_per_core * tile_rows) != rows
    last_block = blocks_total - 1

    def in_map(c, i):
        # Clamp so DMAs stay in-bounds; over-covered blocks are zeroed inside
        # the kernel using the UNCLAMPED logical position.
        return (jnp.minimum(c * blocks_per_core + i, last_block), 0)

    kernel = functools.partial(
        _rmse_partial_kernel,
        tile_rows=tile_rows,
        chunk_rows=chunk_rows,
        valid_rows=rows,
        blocks_per_core=blocks_per_core,
        needs_mask=needs_mask,
    )

    itemsize = max(x.dtype.itemsize, y.dtype.itemsize)
    block_bytes = tile_rows * LANES * itemsize
    # 2 inputs x 2 pipeline buffers + chunk temporaries / accumulator margin;
    # always <= 48 MiB so it is legal on every generation's physical VMEM.
    vmem_limit = min(48 << 20, max(16 << 20, 4 * block_bytes + (8 << 20)))

    partials = pl.pallas_call(
        kernel,
        out_shape=jax.ShapeDtypeStruct((ncores * SUBLANES, LANES), jnp.float32),
        grid_spec=pltpu.PrefetchScalarGridSpec(
            num_scalar_prefetch=0,
            grid=grid,
            in_specs=[
                pl.BlockSpec((tile_rows, LANES), in_map),
                pl.BlockSpec((tile_rows, LANES), in_map),
            ],
            # One lane-dense (8, 128) partial-sum slab per core; invariant in
            # i -> stays resident in VMEM across the reduction axis.
            out_specs=pl.BlockSpec((SUBLANES, LANES), lambda c, i: (c, 0)),
        ),
        compiler_params=pltpu.CompilerParams(
            dimension_semantics=("parallel", "arbitrary"),
            vmem_limit_bytes=int(vmem_limit),
        ),
        cost_estimate=pl.CostEstimate(
            flops=3 * main_n,
            transcendentals=0,
            bytes_accessed=2 * main_n * itemsize + ncores * SUBLANES * LANES * 4,
        ),
    )(x2, y2)

    # Tiny final reduce + mean + sqrt (matches torch: sqrt(MSELoss(x, y))).
    total = jnp.sum(partials, dtype=jnp.float32) + tail
    return jnp.sqrt(total / jnp.float32(total_n))


if __name__ == "__main__":
    key = jax.random.PRNGKey(0)

    # Primary test: NCHW-style input, numel divisible by 128 (no pad path).
    kx, ky = jax.random.split(key)
    shape = (2, 4, 16, 16)
    x = jax.random.normal(kx, shape, dtype=jnp.float32)
    y = jax.random.normal(ky, shape, dtype=jnp.float32)
    loss = jax.block_until_ready(rmse_loss(x, y))
    ref = jnp.sqrt(jnp.mean((x - y) ** 2))
    assert jnp.allclose(loss, ref, rtol=1e-5, atol=1e-6), (loss, ref)

    # Ragged numel (exercises the wrapper-side tail reduction, no pad copy).
    kx2, ky2 = jax.random.split(jax.random.PRNGKey(1))
    shape2 = (2, 3, 5, 7)
    x2 = jax.random.normal(kx2, shape2, dtype=jnp.float32)
    y2 = jax.random.normal(ky2, shape2, dtype=jnp.float32)
    loss2 = jax.block_until_ready(rmse_loss(x2, y2))
    ref2 = jnp.sqrt(jnp.mean((x2 - y2) ** 2))
    assert jnp.allclose(loss2, ref2, rtol=1e-5, atol=1e-6), (loss2, ref2)

    # Lane-divisible but sublane-ragged rows (exercises in-kernel sublane pad).
    kx3, ky3 = jax.random.split(jax.random.PRNGKey(2))
    shape3 = (2, 4, 16, 17)   # 2176 = 17 * 128 elements -> 17 rows
    x3 = jax.random.normal(kx3, shape3, dtype=jnp.float32)
    y3 = jax.random.normal(ky3, shape3, dtype=jnp.float32)
    loss3 = jax.block_until_ready(rmse_loss(x3, y3))
    ref3 = jnp.sqrt(jnp.mean((x3 - y3) ** 2))
    assert jnp.allclose(loss3, ref3, rtol=1e-5, atol=1e-6), (loss3, ref3)

    print("KERNEL_OK")
</pallas_src>

<mosaic_0001>
module attributes {stable_mosaic.version = 11 : i64} {
  func.func @_rmse_partial_kernel(%arg0: i32, %arg1: i32, %arg2: memref<16x128xf32, #tpu.memory_space<vmem>>, %arg3: memref<16x128xf32, #tpu.memory_space<vmem>>, %arg4: memref<8x128xf32, #tpu.memory_space<vmem>>) attributes {dimension_semantics = [#tpu.dimension_semantics<parallel>, #tpu.dimension_semantics<arbitrary>], iteration_bounds = array<i64: 1, 1>, scalar_prefetch = 0 : i64, scratch_operands = 0 : i64, tpu.core_type = #tpu.core_type<tc>, window_params = [{transform_indices = @transform_0, window_bounds = array<i64: 16, 128>}, {transform_indices = @transform_1, window_bounds = array<i64: 16, 128>}, {transform_indices = @transform_2, window_bounds = array<i64: 8, 128>}]} {
    %c0_i32 = arith.constant 0 : i32
    %0 = arith.cmpi eq, %arg1, %c0_i32 : i32
    %1 = arith.extui %0 : i1 to i32
    %c0_i32_0 = arith.constant 0 : i32
    %2 = arith.cmpi ne, %1, %c0_i32_0 : i32
    scf.if %2 {
      %cst_8 = arith.constant 0.000000e+00 : f32
      %12 = vector.broadcast %cst_8 : f32 to vector<8x128xf32>
      %c0_9 = arith.constant 0 : index
      %c0_10 = arith.constant 0 : index
      %13 = vector.load %arg4[%c0_9, %c0_10] : memref<8x128xf32, #tpu.memory_space<vmem>>, vector<8x128xf32>
      tpu.vector_store %arg4[%c0_9, %c0_10], %12 {strides = array<i32>} : memref<8x128xf32, #tpu.memory_space<vmem>>, vector<8x128xf32>,
    } else {
    }
    %c0 = arith.constant 0 : index
    %c0_1 = arith.constant 0 : index
    %3 = vector.load %arg4[%c0, %c0_1] : memref<8x128xf32, #tpu.memory_space<vmem>>, vector<8x128xf32>
    %c0_2 = arith.constant 0 : index
    %c0_3 = arith.constant 0 : index
    %4 = vector.load %arg2[%c0_2, %c0_3] : memref<16x128xf32, #tpu.memory_space<vmem>>, vector<16x128xf32>
    %c0_4 = arith.constant 0 : index
    %c0_5 = arith.constant 0 : index
    %5 = vector.load %arg3[%c0_4, %c0_5] : memref<16x128xf32, #tpu.memory_space<vmem>>, vector<16x128xf32>
    %6 = arith.subf %4, %5 : vector<16x128xf32>
    %7 = arith.mulf %6, %6 : vector<16x128xf32>
    %8 = vector.shape_cast %7 : vector<16x128xf32> to vector<2x8x128xf32>
    %cst = arith.constant dense<0.000000e+00> : vector<8x128xf32>
    %9 = vector.multi_reduction <add>, %8, %cst [0] : vector<2x8x128xf32> to vector<8x128xf32>
    %10 = arith.addf %3, %9 : vector<8x128xf32>
    %c0_6 = arith.constant 0 : index
    %c0_7 = arith.constant 0 : index
    %11 = vector.load %arg4[%c0_6, %c0_7] : memref<8x128xf32, #tpu.memory_space<vmem>>, vector<8x128xf32>
    tpu.vector_store %arg4[%c0_6, %c0_7], %10 {strides = array<i32>} : memref<8x128xf32, #tpu.memory_space<vmem>>, vector<8x128xf32>,
    return
  }
  func.func @transform_0(%arg0: i32, %arg1: i32) -> (i32, i32) {
    %c1_i32 = arith.constant 1 : i32
    %0 = arith.muli %arg0, %c1_i32 : i32
    %1 = arith.addi %0, %arg1 : i32
    %c0_i32 = arith.constant 0 : i32
    %2 = arith.minsi %1, %c0_i32 : i32
    %c0_i32_0 = arith.constant 0 : i32
    %c0_i32_1 = arith.constant 0 : i32
    return %2, %c0_i32_0 : i32, i32
  }
  func.func @transform_1(%arg0: i32, %arg1: i32) -> (i32, i32) {
    %c1_i32 = arith.constant 1 : i32
    %0 = arith.muli %arg0, %c1_i32 : i32
    %1 = arith.addi %0, %arg1 : i32
    %c0_i32 = arith.constant 0 : i32
    %2 = arith.minsi %1, %c0_i32 : i32
    %c0_i32_0 = arith.constant 0 : i32
    %c0_i32_1 = arith.constant 0 : i32
    return %2, %c0_i32_0 : i32, i32
  }
  func.func @transform_2(%arg0: i32, %arg1: i32) -> (i32, i32) {
    %c0_i32 = arith.constant 0 : i32
    %c0_i32_0 = arith.constant 0 : i32
    return %arg0, %c0_i32 : i32, i32
  }
}

</mosaic_0001>

<bundles_post_ra>
// kernel: tpu_custom_call.1
= control target key start
LH: loop header
LB: loop body
LE: loop exit
PB: predicated region body
PF: predicated region fallthrough
CT: control target
= control target key end

     0   :  { %7 = vsyncpa [#allocation3], 0  ;;  %s231_s0 = inlined_call_operand.hbm [shape: f32[16,128], index: 0, kind: input, shape index: {}]   ;;  %s232_s1 = inlined_call_operand.hbm [shape: f32[16,128], index: 1, kind: input, shape index: {}]   ;;  %s233_s2 = inlined_call_operand.hbm [shape: f32[8,128], index: 2, kind: output, shape index: {}]  }
   0x1   :  { %8 = vsyncpa [#allocation6], 0 }
   0x2   :  { %9 = vsyncpa [#allocation4], 0  ;;  %s175_s9 = smov [#allocation2]   ;;  %s103_s13 = scalar_lea.hbm %s231_s0, 256 }
   0x3   :  { %s21_s10 = sshll.u32 %s175_s9, 4  ;;  %p104_p0 = scmp.ne.s32.totalorder %s231_s0, %s103_s13  ;;  %s22_s10 = int_to_ptr.vmem [resolvable:$true] %s21_s10 }
   0x4   :  { %p107_p1 = scmp.lt.u32.totalorder %s103_s13, %s231_s0 }
   0x6   :  { %p109_p2 = pnand %p107_p1, %p104_p0 }
   0x8   :  { %112 = shalt.err (!%p109_p2)
}
   0x9   :  { %s113_s18 = scalar_lea.vmem %s22_s10, 256  ;;  %p118_p4 = scmp.lt.s32.totalorder %s22_s10, %s22_s10 }
   0xa   :  { %p114_p3 = scmp.ne.s32.totalorder %s22_s10, %s113_s18  ;;  %p119_p5 = scmp.lt.s32.totalorder %s113_s18, %s113_s18 }
   0xc   :  { %p120_p6 = por %p119_p5, %p118_p4 }
   0xe   :  { %p121_p7 = pnand %p120_p6, %p114_p3 }
  0x10   :  { %124 = shalt.err (!%p121_p7)
}
  0x11   :  { %s176_s19 = smov 128   ;;  %s177_s20 = smov 8  }
  0x12   :  { %27 = dma.hbm_to_vmem [thread:$0]  %s231_s0, 256, %s22_s10, [#allocation3], %s176_s19, %s176_s19, %s177_s20  }
  0x13   :  { %s178_s23 = smov [#allocation5]   ;;  %s125_s27 = scalar_lea.hbm %s232_s1, 256 }
  0x14   :  { %s39_s24 = sshll.u32 %s178_s23, 4  ;;  %p126_p8 = scmp.ne.s32.totalorder %s232_s1, %s125_s27  ;;  %s40_s24 = int_to_ptr.vmem [resolvable:$true] %s39_s24 }
  0x15   :  { %p129_p9 = scmp.lt.u32.totalorder %s125_s27, %s232_s1 }
  0x17   :  { %p131_p10 = pnand %p129_p9, %p126_p8 }
  0x19   :  { %134 = shalt.err (!%p131_p10)
}
  0x1a   :  { %s135_s4 = scalar_lea.vmem %s40_s24, 256  ;;  %p140_p12 = scmp.lt.s32.totalorder %s40_s24, %s40_s24 }
  0x1b   :  { %p136_p11 = scmp.ne.s32.totalorder %s40_s24, %s135_s4  ;;  %p141_p13 = scmp.lt.s32.totalorder %s135_s4, %s135_s4 }
  0x1d   :  { %p142_p0 = por %p141_p13, %p140_p12 }
  0x1f   :  { %p143_p1 = pnand %p142_p0, %p136_p11 }
  0x21   :  { %146 = shalt.err (!%p143_p1)
}
  0x22   :  { %45 = dma.hbm_to_vmem [thread:$0]  %s232_s1, 256, %s40_s24, [#allocation6], %s176_s19, %s176_s19, %s177_s20  }
  0x23   :  { %169 = dma.done.wait [#allocation3], 256  }
  0x24   :  { %170 = vsyncadd [#allocation3], 4294967040 }
  0x25   :  { %171 = dma.done.wait [#allocation6], 256  }
  0x26   :  { %172 = vsyncadd [#allocation6], 4294967040  ;;  %v66_v0 = vld [vmem:[#allocation2] sm:$0xff]  ;;  %v67_v1 = vld [vmem:[#allocation2 + $0x8] sm:$0xff]  ;;  %s179_s6 = smov [#allocation7]  }
  0x27   :  { %v68_v2 = vld [vmem:[#allocation5] sm:$0xff]  ;;  %v69_v3 = vld [vmem:[#allocation5 + $0x8] sm:$0xff]  ;;  %s83_s7 = sshll.u32 %s179_s6, 4  ;;  %s84_s7 = int_to_ptr.vmem [resolvable:$true] %s83_s7 }
  0x28   :  { %v70_v4 = vsub.f32 %v66_v0, %v68_v2  ;;  %v71_v5 = vsub.f32 %v67_v1, %v69_v3  ;;  %s147_s8 = scalar_lea.vmem %s84_s7, 128  ;;  %p152_p3 = scmp.lt.s32.totalorder %s84_s7, %s84_s7 }
  0x29   :  { %p148_p2 = scmp.ne.s32.totalorder %s84_s7, %s147_s8  ;;  %p153_p4 = scmp.lt.s32.totalorder %s147_s8, %s147_s8 }
  0x2a   :  { %v72_v6 = vmul.f32 %v70_v4, %v70_v4  ;;  %v73_v7 = vmul.f32 %v71_v5, %v71_v5 }
  0x2b   :  { %p154_p5 = por %p153_p4, %p152_p3 }
  0x2c   :  { %v74_v8 = vadd.f32 %v73_v7, %v72_v6 }
  0x2d   :  { %p155_p6 = pnand %p154_p5, %p148_p2 }
  0x2e   :  { %76 = vst [vmem:[#allocation7] sm:$0xff] %v74_v8 }
  0x2f   :  { %158 = shalt.err (!%p155_p6)
}
  0x30   :  { %s159_s10 = scalar_lea.hbm %s233_s2, 128 }
  0x31   :  { %p160_p7 = scmp.ne.s32.totalorder %s233_s2, %s159_s10  ;;  %p163_p8 = scmp.lt.u32.totalorder %s159_s10, %s233_s2 }
  0x33   :  { %p165_p9 = pnand %p163_p8, %p160_p7 }
  0x35   :  { %168 = shalt.err (!%p165_p9)
}
  0x36   :  { %86 = dma.vmem_to_hbm [thread:$0]  %s84_s7, 128, %s233_s2, [#allocation4]  }
  0x37   :  { %173 = dma.done.wait [#allocation4], 128  }
  0x38   :  { %174 = vsyncadd [#allocation4], 4294967168 }
  0x39   :  { %90 = vsyncpa [#allocation3], 1 }
  0x3a   :  { %91 = vsyncpa [#allocation6], 1 }
  0x3b   :  { %92 = vsyncpa [#allocation4], 1 }

</bundles_post_ra>
